<compile_context>
chip_gen: v6e
topology: v6e:2x2x1
jax: 0.10.0
libtpu: 0.0.40
codegen_flags: <defaults>
</compile_context>

<pallas_src>
import functools

import jax
import jax.numpy as jnp
from jax.experimental import pallas as pl
from jax.experimental.pallas import tpu as pltpu


def _round_up(x, m):
    return ((x + m - 1) // m) * m


def _pad2(x, rows, cols):
    return jnp.pad(x, ((0, rows - x.shape[0]), (0, cols - x.shape[1])))


def _pick_tile(n_pad, target):
    """Largest multiple of 128 <= target that divides n_pad (n_pad % 128 == 0)."""
    t = min(max(target, 128), n_pad)
    t -= t % 128
    while n_pad % t != 0:
        t -= 128
    return t


def _vmem_physical_bytes():
    """Generation-aware VMEM capacity (128 MiB v5e/v6e, 64 MiB per-core v7x)."""
    try:
        info = pltpu.get_tpu_info()
        cap = getattr(info, "vmem_capacity_bytes", None)
        if cap:
            return int(cap)
    except Exception:
        pass
    return 64 * 1024 * 1024          # conservative fallback = v7x per-TC VMEM


def _working_set_bytes(tm, tk, fi, fo, out_itemsize):
    """Per-step VMEM footprint with default double-buffering + f32 accumulator."""
    dbl = 2 * (tm * tk * 1           # A tile (int8 counts)
               + tk * fi * 2         # x[k] (bf16 neighbors)
               + tm * fi * 2         # x[i] (bf16 root)
               + tm * 4              # 1/deg (f32)
               + 2 * fi * fo * 2     # fused W_lr (bf16, grid-resident)
               + fo * 4              # bias (f32)
               + tm * fo * out_itemsize)
    return dbl + tm * fi * 4         # aggregation accumulator scratch


def _sage_layer_kernel(a_ref, xk_ref, xi_ref, dinv_ref, wlr_ref, b_ref,
                       o_ref, acc_ref, *, apply_relu):
    """One (i, k) grid step of:
       out = maybe_relu( (diag(1/deg) @ A_cnt @ x) @ W_l + x @ W_r + b )."""
    k = pl.program_id(1)

    @pl.when(k == 0)
    def _():
        acc_ref[...] = jnp.zeros_like(acc_ref)

    # A tile holds small int8 edge counts; cast to bf16 (exact) for the MXU.
    a = a_ref[...].astype(jnp.bfloat16)
    acc_ref[...] += jnp.dot(a, xk_ref[...], preferred_element_type=jnp.float32)

    @pl.when(k == pl.num_programs(1) - 1)
    def _():
        # Exact mean: scale the f32 count-sum by the per-row 1/deg in f32.
        agg = (acc_ref[...] * dinv_ref[...]).astype(jnp.bfloat16)
        # Fused neighbor + root projection: one MXU pass with K = 2*fi.
        cat = jnp.concatenate([agg, xi_ref[...]], axis=-1)
        out = jnp.dot(cat, wlr_ref[...],
                      preferred_element_type=jnp.float32) + b_ref[...]
        if apply_relu:
            out = jnp.maximum(out, 0.0)
        o_ref[...] = out.astype(o_ref.dtype)


def sage_layer(a_i8, deg_inv, x_bf16, w_lr, b, *, apply_relu, out_dtype):
    """One SAGEConv layer on padded operands (A int8 counts, x/W bf16, b/deg f32)."""
    n_pad = a_i8.shape[0]
    fi = x_bf16.shape[1]          # padded input feature width (multiple of 128)
    fo = w_lr.shape[1]            # padded output feature width (multiple of 128)
    out_itemsize = jnp.dtype(out_dtype).itemsize

    budget = (_vmem_physical_bytes() * 3) // 4

    # Row tile: big enough to amortize per-step overhead and x[k] re-streaming,
    # but keep >= 2 row tiles so the "parallel" axis shards across v7x's 2 TCs.
    tm_target = n_pad if n_pad < 256 else min(512, n_pad // 2)
    tm = _pick_tile(n_pad, tm_target)
    tk = _pick_tile(n_pad, 1024)
    while _working_set_bytes(tm, tk, fi, fo, out_itemsize) > budget:
        if tk > 128:
            tk = _pick_tile(n_pad, tk - 128)
        elif tm > 128:
            tm = _pick_tile(n_pad, tm - 128)
        else:
            break

    grid = (n_pad // tm, n_pad // tk)
    kernel = functools.partial(_sage_layer_kernel, apply_relu=apply_relu)

    flops = 2 * n_pad * n_pad * fi + 2 * n_pad * (2 * fi) * fo
    bytes_accessed = (a_i8.size                        # A streamed once (int8)
                      + grid[0] * x_bf16.size * 2      # x[k] re-streamed per row tile
                      + x_bf16.size * 2                # x[i]
                      + deg_inv.size * 4
                      + w_lr.size * 2 + b.size * 4
                      + n_pad * fo * out_itemsize)
    vmem_limit = int(min(budget, 100 * 1024 * 1024))

    return pl.pallas_call(
        kernel,
        out_shape=jax.ShapeDtypeStruct((n_pad, fo), out_dtype),
        grid=grid,
        in_specs=[
            pl.BlockSpec((tm, tk), lambda i, k: (i, k)),      # A[i, k] counts tile
            pl.BlockSpec((tk, fi), lambda i, k: (k, 0)),      # x[k] (neighbors)
            pl.BlockSpec((tm, fi), lambda i, k: (i, 0)),      # x[i] (root)
            pl.BlockSpec((tm, 1), lambda i, k: (i, 0)),       # 1/deg row scale
            pl.BlockSpec((2 * fi, fo), lambda i, k: (0, 0)),  # fused [W_l; W_r]
            pl.BlockSpec((1, fo), lambda i, k: (0, 0)),       # bias
        ],
        out_specs=pl.BlockSpec((tm, fo), lambda i, k: (i, 0)),
        scratch_shapes=[pltpu.VMEM((tm, fi), jnp.float32)],   # aggregation acc
        compiler_params=pltpu.CompilerParams(
            dimension_semantics=("parallel", "arbitrary"),
            vmem_limit_bytes=vmem_limit,
        ),
        cost_estimate=pl.CostEstimate(
            flops=flops, transcendentals=0, bytes_accessed=bytes_accessed),
    )(a_i8, x_bf16, x_bf16, deg_inv, w_lr, b)


def build_adjacency(edge_index, num_nodes_padded):
    """Edge-multiplicity counts (int8) and exact f32 1/in-degree per row.

    A_cnt[i, j] = #edges j -> i (PyG convention: row 0 = src, row 1 = dst);
    deg_inv[i]  = 1 / max(sum_j A_cnt[i, j], 1).
    """
    src, dst = edge_index[0], edge_index[1]
    counts = jnp.zeros((num_nodes_padded, num_nodes_padded), jnp.int8)
    counts = counts.at[dst, src].add(1)
    deg = counts.sum(axis=1, dtype=jnp.int32)
    deg_inv = (1.0 / jnp.maximum(deg, 1).astype(jnp.float32)).reshape(-1, 1)
    return counts, deg_inv


def init_params(key, in_channels, hidden_channels, out_channels):
    """Deterministic glorot-uniform-style init for the two SAGEConv layers."""
    def glorot(k, fan_in, fan_out):
        limit = jnp.sqrt(6.0 / (fan_in + fan_out))
        return jax.random.uniform(k, (fan_in, fan_out), jnp.float32, -limit, limit)

    k1, k2, k3, k4 = jax.random.split(key, 4)
    return {
        "w_l1": glorot(k1, in_channels, hidden_channels),   # lin_l (neighbors)
        "w_r1": glorot(k2, in_channels, hidden_channels),   # lin_r (root)
        "b1": jnp.zeros((hidden_channels,), jnp.float32),
        "w_l2": glorot(k3, hidden_channels, out_channels),
        "w_r2": glorot(k4, hidden_channels, out_channels),
        "b2": jnp.zeros((out_channels,), jnp.float32),
    }


@jax.jit
def gnn_encoder(params, x, edge_index):
    n, f_in = x.shape
    hidden = params["w_l1"].shape[1]
    f_out = params["w_l2"].shape[1]

    # Pad the node axis and all feature axes to the 128-lane granularity.
    n_pad = _round_up(n, 128)
    fi_pad = _round_up(f_in, 128)
    fh_pad = _round_up(hidden, 128)
    fo_pad = _round_up(f_out, 128)

    a_cnt, deg_inv = build_adjacency(edge_index, n_pad)      # int8 counts + f32 1/deg

    x_p = _pad2(x, n_pad, fi_pad).astype(jnp.bfloat16)
    # Fused projection weights: W_lr = [[W_l], [W_r]]  (2*fi, fo).
    wlr1 = jnp.concatenate(
        [_pad2(params["w_l1"], fi_pad, fh_pad),
         _pad2(params["w_r1"], fi_pad, fh_pad)], axis=0).astype(jnp.bfloat16)
    b1 = _pad2(params["b1"].reshape(1, -1), 1, fh_pad)       # f32
    wlr2 = jnp.concatenate(
        [_pad2(params["w_l2"], fh_pad, fo_pad),
         _pad2(params["w_r2"], fh_pad, fo_pad)], axis=0).astype(jnp.bfloat16)
    b2 = _pad2(params["b2"].reshape(1, -1), 1, fo_pad)       # f32

    h = sage_layer(a_cnt, deg_inv, x_p, wlr1, b1,
                   apply_relu=True, out_dtype=jnp.bfloat16)
    out = sage_layer(a_cnt, deg_inv, h, wlr2, b2,
                     apply_relu=False, out_dtype=jnp.bfloat16)
    # bf16 writeback (half HBM traffic); upcast after stripping the padding.
    return out[:n, :f_out].astype(jnp.float32)


if __name__ == "__main__":
    key = jax.random.PRNGKey(0)
    k_x, k_e, k_p = jax.random.split(key, 3)

    num_nodes = 16
    in_channels = 8
    hidden_channels = 32
    out_channels = 16
    num_edges = 40

    x = jax.random.normal(k_x, (num_nodes, in_channels), jnp.float32)
    edge_index = jax.random.randint(k_e, (2, num_edges), 0, num_nodes,
                                    dtype=jnp.int32)
    params = init_params(k_p, in_channels, hidden_channels, out_channels)

    out = gnn_encoder(params, x, edge_index)
    jax.block_until_ready(out)

    # Pure-JAX f32 reference.  The kernel uses bf16 MXU operands with f32
    # accumulation (and an exact f32 1/deg scale), so compare with a
    # correspondingly loose tolerance.
    src, dst = edge_index[0], edge_index[1]
    a_ref = jnp.zeros((num_nodes, num_nodes), jnp.float32).at[dst, src].add(1.0)
    a_ref = a_ref / jnp.maximum(a_ref.sum(axis=1, keepdims=True), 1.0)
    h_ref = jnp.maximum(a_ref @ x @ params["w_l1"] + x @ params["w_r1"]
                        + params["b1"], 0.0)
    o_ref = (a_ref @ h_ref @ params["w_l2"] + h_ref @ params["w_r2"]
             + params["b2"])

    assert out.shape == (num_nodes, out_channels)
    assert jnp.allclose(out, o_ref, atol=5e-2, rtol=5e-2), \
        float(jnp.max(jnp.abs(out - o_ref)))

    print("KERNEL_OK")
</pallas_src>

<mosaic_0001>
module attributes {stable_mosaic.version = 11 : i64} {
  func.func @_sage_layer_kernel(%arg0: i32, %arg1: i32, %arg2: memref<128x128xi8, #tpu.memory_space<vmem>>, %arg3: memref<128x128xbf16, #tpu.memory_space<vmem>>, %arg4: memref<128x128xbf16, #tpu.memory_space<vmem>>, %arg5: memref<128x1xf32, #tpu.memory_space<vmem>>, %arg6: memref<256x128xbf16, #tpu.memory_space<vmem>>, %arg7: memref<1x128xf32, #tpu.memory_space<vmem>>, %arg8: memref<128x128xbf16, #tpu.memory_space<vmem>>, %arg9: memref<128x128xf32, #tpu.memory_space<vmem>>) attributes {dimension_semantics = [#tpu.dimension_semantics<parallel>, #tpu.dimension_semantics<arbitrary>], iteration_bounds = array<i64: 1, 1>, scalar_prefetch = 0 : i64, scratch_operands = 1 : i64, tpu.core_type = #tpu.core_type<tc>, window_params = [{transform_indices = @transform_0, window_bounds = array<i64: 128, 128>}, {transform_indices = @transform_1, window_bounds = array<i64: 128, 128>}, {transform_indices = @transform_2, window_bounds = array<i64: 128, 128>}, {transform_indices = @transform_3, window_bounds = array<i64: 128, 1>}, {pipeline_mode = #tpu.pipeline_mode<synchronous>, transform_indices = @transform_4, window_bounds = array<i64: 256, 128>}, {pipeline_mode = #tpu.pipeline_mode<synchronous>, transform_indices = @transform_5, window_bounds = array<i64: 1, 128>}, {transform_indices = @transform_6, window_bounds = array<i64: 128, 128>}]} {
    %c0_i32 = arith.constant 0 : i32
    %0 = arith.cmpi eq, %arg1, %c0_i32 : i32
    %1 = arith.extui %0 : i1 to i32
    %c0_i32_0 = arith.constant 0 : i32
    %2 = arith.cmpi ne, %1, %c0_i32_0 : i32
    scf.if %2 {
      %cst_10 = arith.constant 0.000000e+00 : f32
      %13 = vector.broadcast %cst_10 : f32 to vector<128x128xf32>
      %c0_11 = arith.constant 0 : index
      %c0_12 = arith.constant 0 : index
      %14 = vector.load %arg9[%c0_11, %c0_12] : memref<128x128xf32, #tpu.memory_space<vmem>>, vector<128x128xf32>
      tpu.vector_store %arg9[%c0_11, %c0_12], %13 {strides = array<i32>} : memref<128x128xf32, #tpu.memory_space<vmem>>, vector<128x128xf32>,
    } else {
    }
    %c0 = arith.constant 0 : index
    %c0_1 = arith.constant 0 : index
    %3 = vector.load %arg2[%c0, %c0_1] : memref<128x128xi8, #tpu.memory_space<vmem>>, vector<128x128xi8>
    %4 = arith.sitofp %3 : vector<128x128xi8> to vector<128x128xbf16>
    %c0_2 = arith.constant 0 : index
    %c0_3 = arith.constant 0 : index
    %5 = vector.load %arg9[%c0_2, %c0_3] : memref<128x128xf32, #tpu.memory_space<vmem>>, vector<128x128xf32>
    %c0_4 = arith.constant 0 : index
    %c0_5 = arith.constant 0 : index
    %6 = vector.load %arg3[%c0_4, %c0_5] : memref<128x128xbf16, #tpu.memory_space<vmem>>, vector<128x128xbf16>
    %cst = arith.constant dense<0.000000e+00> : vector<128x128xf32>
    %7 = tpu.matmul %4, %6, %cst {dimension_numbers = #tpu.dot_dimension_numbers<[1], [0], [0], [1], [0, 0, 1, 1], [], []>} : vector<128x128xbf16>, vector<128x128xbf16>, vector<128x128xf32> -> vector<128x128xf32>
    %8 = arith.addf %5, %7 : vector<128x128xf32>
    %c0_6 = arith.constant 0 : index
    %c0_7 = arith.constant 0 : index
    %9 = vector.load %arg9[%c0_6, %c0_7] : memref<128x128xf32, #tpu.memory_space<vmem>>, vector<128x128xf32>
    tpu.vector_store %arg9[%c0_6, %c0_7], %8 {strides = array<i32>} : memref<128x128xf32, #tpu.memory_space<vmem>>, vector<128x128xf32>,
    %c0_i32_8 = arith.constant 0 : i32
    %10 = arith.cmpi eq, %arg1, %c0_i32_8 : i32
    %11 = arith.extui %10 : i1 to i32
    %c0_i32_9 = arith.constant 0 : i32
    %12 = arith.cmpi ne, %11, %c0_i32_9 : i32
    scf.if %12 {
      %c0_10 = arith.constant 0 : index
      %c0_11 = arith.constant 0 : index
      %13 = vector.load %arg9[%c0_10, %c0_11] : memref<128x128xf32, #tpu.memory_space<vmem>>, vector<128x128xf32>
      %c0_12 = arith.constant 0 : index
      %c0_13 = arith.constant 0 : index
      %14 = vector.load %arg5[%c0_12, %c0_13] : memref<128x1xf32, #tpu.memory_space<vmem>>, vector<128x1xf32>
      %15 = vector.broadcast %14 : vector<128x1xf32> to vector<128x128xf32>
      %16 = arith.mulf %13, %15 : vector<128x128xf32>
      %17 = arith.truncf %16 : vector<128x128xf32> to vector<128x128xbf16>
      %c0_14 = arith.constant 0 : index
      %c0_15 = arith.constant 0 : index
      %18 = vector.load %arg4[%c0_14, %c0_15] : memref<128x128xbf16, #tpu.memory_space<vmem>>, vector<128x128xbf16>
      %19 = tpu.concatenate %17, %18 in 1 : vector<128x128xbf16>, vector<128x128xbf16> -> vector<128x256xbf16>
      %c0_16 = arith.constant 0 : index
      %c0_17 = arith.constant 0 : index
      %20 = vector.load %arg6[%c0_16, %c0_17] : memref<256x128xbf16, #tpu.memory_space<vmem>>, vector<256x128xbf16>
      %cst_18 = arith.constant dense<0.000000e+00> : vector<128x128xf32>
      %21 = tpu.matmul %19, %20, %cst_18 {dimension_numbers = #tpu.dot_dimension_numbers<[1], [0], [0], [1], [0, 0, 1, 1], [], []>} : vector<128x256xbf16>, vector<256x128xbf16>, vector<128x128xf32> -> vector<128x128xf32>
      %c0_19 = arith.constant 0 : index
      %c0_20 = arith.constant 0 : index
      %22 = vector.load %arg7[%c0_19, %c0_20] : memref<1x128xf32, #tpu.memory_space<vmem>>, vector<1x128xf32>
      %23 = vector.broadcast %22 : vector<1x128xf32> to vector<128x128xf32>
      %24 = arith.addf %21, %23 : vector<128x128xf32>
      %25 = arith.truncf %24 : vector<128x128xf32> to vector<128x128xbf16>
      %c0_21 = arith.constant 0 : index
      %c0_22 = arith.constant 0 : index
      %26 = vector.load %arg8[%c0_21, %c0_22] : memref<128x128xbf16, #tpu.memory_space<vmem>>, vector<128x128xbf16>
      tpu.vector_store %arg8[%c0_21, %c0_22], %25 {strides = array<i32>} : memref<128x128xbf16, #tpu.memory_space<vmem>>, vector<128x128xbf16>,
    } else {
    }
    return
  }
  func.func @transform_0(%arg0: i32, %arg1: i32) -> (i32, i32) {
    %c0_i32 = arith.constant 0 : i32
    return %arg0, %arg1 : i32, i32
  }
  func.func @transform_1(%arg0: i32, %arg1: i32) -> (i32, i32) {
    %c0_i32 = arith.constant 0 : i32
    %c0_i32_0 = arith.constant 0 : i32
    return %arg1, %c0_i32 : i32, i32
  }
  func.func @transform_2(%arg0: i32, %arg1: i32) -> (i32, i32) {
    %c0_i32 = arith.constant 0 : i32
    %c0_i32_0 = arith.constant 0 : i32
    return %arg0, %c0_i32 : i32, i32
  }
  func.func @transform_3(%arg0: i32, %arg1: i32) -> (i32, i32) {
    %c0_i32 = arith.constant 0 : i32
    %c0_i32_0 = arith.constant 0 : i32
    return %arg0, %c0_i32 : i32, i32
  }
  func.func @transform_4(%arg0: i32, %arg1: i32) -> (i32, i32) {
    %c0_i32 = arith.constant 0 : i32
    %c0_i32_0 = arith.constant 0 : i32
    %c0_i32_1 = arith.constant 0 : i32
    return %c0_i32, %c0_i32_0 : i32, i32
  }
  func.func @transform_5(%arg0: i32, %arg1: i32) -> (i32, i32) {
    %c0_i32 = arith.constant 0 : i32
    %c0_i32_0 = arith.constant 0 : i32
    %c0_i32_1 = arith.constant 0 : i32
    return %c0_i32, %c0_i32_0 : i32, i32
  }
  func.func @transform_6(%arg0: i32, %arg1: i32) -> (i32, i32) {
    %c0_i32 = arith.constant 0 : i32
    %c0_i32_0 = arith.constant 0 : i32
    return %arg0, %c0_i32 : i32, i32
  }
}

module attributes {stable_mosaic.version = 11 : i64} {
  func.func @_sage_layer_kernel(%arg0: i32, %arg1: i32, %arg2: memref<128x128xi8, #tpu.memory_space<vmem>>, %arg3: memref<128x128xbf16, #tpu.memory_space<vmem>>, %arg4: memref<128x128xbf16, #tpu.memory_space<vmem>>, %arg5: memref<128x1xf32, #tpu.memory_space<vmem>>, %arg6: memref<256x128xbf16, #tpu.memory_space<vmem>>, %arg7: memref<1x128xf32, #tpu.memory_space<vmem>>, %arg8: memref<128x128xbf16, #tpu.memory_space<vmem>>, %arg9: memref<128x128xf32, #tpu.memory_space<vmem>>) attributes {dimension_semantics = [#tpu.dimension_semantics<parallel>, #tpu.dimension_semantics<arbitrary>], iteration_bounds = array<i64: 1, 1>, scalar_prefetch = 0 : i64, scratch_operands = 1 : i64, tpu.core_type = #tpu.core_type<tc>, window_params = [{transform_indices = @transform_0, window_bounds = array<i64: 128, 128>}, {transform_indices = @transform_1, window_bounds = array<i64: 128, 128>}, {transform_indices = @transform_2, window_bounds = array<i64: 128, 128>}, {transform_indices = @transform_3, window_bounds = array<i64: 128, 1>}, {pipeline_mode = #tpu.pipeline_mode<synchronous>, transform_indices = @transform_4, window_bounds = array<i64: 256, 128>}, {pipeline_mode = #tpu.pipeline_mode<synchronous>, transform_indices = @transform_5, window_bounds = array<i64: 1, 128>}, {transform_indices = @transform_6, window_bounds = array<i64: 128, 128>}]} {
    %c0_i32 = arith.constant 0 : i32
    %0 = arith.cmpi eq, %arg1, %c0_i32 : i32
    %1 = arith.extui %0 : i1 to i32
    %c0_i32_0 = arith.constant 0 : i32
    %2 = arith.cmpi ne, %1, %c0_i32_0 : i32
    scf.if %2 {
      %cst_10 = arith.constant 0.000000e+00 : f32
      %13 = vector.broadcast %cst_10 : f32 to vector<128x128xf32>
      %c0_11 = arith.constant 0 : index
      %c0_12 = arith.constant 0 : index
      %14 = vector.load %arg9[%c0_11, %c0_12] : memref<128x128xf32, #tpu.memory_space<vmem>>, vector<128x128xf32>
      tpu.vector_store %arg9[%c0_11, %c0_12], %13 {strides = array<i32>} : memref<128x128xf32, #tpu.memory_space<vmem>>, vector<128x128xf32>,
    } else {
    }
    %c0 = arith.constant 0 : index
    %c0_1 = arith.constant 0 : index
    %3 = vector.load %arg2[%c0, %c0_1] : memref<128x128xi8, #tpu.memory_space<vmem>>, vector<128x128xi8>
    %4 = arith.sitofp %3 : vector<128x128xi8> to vector<128x128xbf16>
    %c0_2 = arith.constant 0 : index
    %c0_3 = arith.constant 0 : index
    %5 = vector.load %arg9[%c0_2, %c0_3] : memref<128x128xf32, #tpu.memory_space<vmem>>, vector<128x128xf32>
    %c0_4 = arith.constant 0 : index
    %c0_5 = arith.constant 0 : index
    %6 = vector.load %arg3[%c0_4, %c0_5] : memref<128x128xbf16, #tpu.memory_space<vmem>>, vector<128x128xbf16>
    %cst = arith.constant dense<0.000000e+00> : vector<128x128xf32>
    %7 = tpu.matmul %4, %6, %cst {dimension_numbers = #tpu.dot_dimension_numbers<[1], [0], [0], [1], [0, 0, 1, 1], [], []>} : vector<128x128xbf16>, vector<128x128xbf16>, vector<128x128xf32> -> vector<128x128xf32>
    %8 = arith.addf %5, %7 : vector<128x128xf32>
    %c0_6 = arith.constant 0 : index
    %c0_7 = arith.constant 0 : index
    %9 = vector.load %arg9[%c0_6, %c0_7] : memref<128x128xf32, #tpu.memory_space<vmem>>, vector<128x128xf32>
    tpu.vector_store %arg9[%c0_6, %c0_7], %8 {strides = array<i32>} : memref<128x128xf32, #tpu.memory_space<vmem>>, vector<128x128xf32>,
    %c0_i32_8 = arith.constant 0 : i32
    %10 = arith.cmpi eq, %arg1, %c0_i32_8 : i32
    %11 = arith.extui %10 : i1 to i32
    %c0_i32_9 = arith.constant 0 : i32
    %12 = arith.cmpi ne, %11, %c0_i32_9 : i32
    scf.if %12 {
      %c0_10 = arith.constant 0 : index
      %c0_11 = arith.constant 0 : index
      %13 = vector.load %arg9[%c0_10, %c0_11] : memref<128x128xf32, #tpu.memory_space<vmem>>, vector<128x128xf32>
      %c0_12 = arith.constant 0 : index
      %c0_13 = arith.constant 0 : index
      %14 = vector.load %arg5[%c0_12, %c0_13] : memref<128x1xf32, #tpu.memory_space<vmem>>, vector<128x1xf32>
      %15 = vector.broadcast %14 : vector<128x1xf32> to vector<128x128xf32>
      %16 = arith.mulf %13, %15 : vector<128x128xf32>
      %17 = arith.truncf %16 : vector<128x128xf32> to vector<128x128xbf16>
      %c0_14 = arith.constant 0 : index
      %c0_15 = arith.constant 0 : index
      %18 = vector.load %arg4[%c0_14, %c0_15] : memref<128x128xbf16, #tpu.memory_space<vmem>>, vector<128x128xbf16>
      %19 = tpu.concatenate %17, %18 in 1 : vector<128x128xbf16>, vector<128x128xbf16> -> vector<128x256xbf16>
      %c0_16 = arith.constant 0 : index
      %c0_17 = arith.constant 0 : index
      %20 = vector.load %arg6[%c0_16, %c0_17] : memref<256x128xbf16, #tpu.memory_space<vmem>>, vector<256x128xbf16>
      %cst_18 = arith.constant dense<0.000000e+00> : vector<128x128xf32>
      %21 = tpu.matmul %19, %20, %cst_18 {dimension_numbers = #tpu.dot_dimension_numbers<[1], [0], [0], [1], [0, 0, 1, 1], [], []>} : vector<128x256xbf16>, vector<256x128xbf16>, vector<128x128xf32> -> vector<128x128xf32>
      %c0_19 = arith.constant 0 : index
      %c0_20 = arith.constant 0 : index
      %22 = vector.load %arg7[%c0_19, %c0_20] : memref<1x128xf32, #tpu.memory_space<vmem>>, vector<1x128xf32>
      %23 = vector.broadcast %22 : vector<1x128xf32> to vector<128x128xf32>
      %24 = arith.addf %21, %23 : vector<128x128xf32>
      %cst_21 = arith.constant 0.000000e+00 : f32
      %25 = vector.broadcast %cst_21 : f32 to vector<128x128xf32>
      %26 = arith.maximumf %24, %25 : vector<128x128xf32>
      %27 = arith.truncf %26 : vector<128x128xf32> to vector<128x128xbf16>
      %c0_22 = arith.constant 0 : index
      %c0_23 = arith.constant 0 : index
      %28 = vector.load %arg8[%c0_22, %c0_23] : memref<128x128xbf16, #tpu.memory_space<vmem>>, vector<128x128xbf16>
      tpu.vector_store %arg8[%c0_22, %c0_23], %27 {strides = array<i32>} : memref<128x128xbf16, #tpu.memory_space<vmem>>, vector<128x128xbf16>,
    } else {
    }
    return
  }
  func.func @transform_0(%arg0: i32, %arg1: i32) -> (i32, i32) {
    %c0_i32 = arith.constant 0 : i32
    return %arg0, %arg1 : i32, i32
  }
  func.func @transform_1(%arg0: i32, %arg1: i32) -> (i32, i32) {
    %c0_i32 = arith.constant 0 : i32
    %c0_i32_0 = arith.constant 0 : i32
    return %arg1, %c0_i32 : i32, i32
  }
  func.func @transform_2(%arg0: i32, %arg1: i32) -> (i32, i32) {
    %c0_i32 = arith.constant 0 : i32
    %c0_i32_0 = arith.constant 0 : i32
    return %arg0, %c0_i32 : i32, i32
  }
  func.func @transform_3(%arg0: i32, %arg1: i32) -> (i32, i32) {
    %c0_i32 = arith.constant 0 : i32
    %c0_i32_0 = arith.constant 0 : i32
    return %arg0, %c0_i32 : i32, i32
  }
  func.func @transform_4(%arg0: i32, %arg1: i32) -> (i32, i32) {
    %c0_i32 = arith.constant 0 : i32
    %c0_i32_0 = arith.constant 0 : i32
    %c0_i32_1 = arith.constant 0 : i32
    return %c0_i32, %c0_i32_0 : i32, i32
  }
  func.func @transform_5(%arg0: i32, %arg1: i32) -> (i32, i32) {
    %c0_i32 = arith.constant 0 : i32
    %c0_i32_0 = arith.constant 0 : i32
    %c0_i32_1 = arith.constant 0 : i32
    return %c0_i32, %c0_i32_0 : i32, i32
  }
  func.func @transform_6(%arg0: i32, %arg1: i32) -> (i32, i32) {
    %c0_i32 = arith.constant 0 : i32
    %c0_i32_0 = arith.constant 0 : i32
    return %arg0, %c0_i32 : i32, i32
  }
}

</mosaic_0001>

<bundles_post_ra>
// kernel: gnn_encoder.2
= control target key start
LH: loop header
LB: loop body
LE: loop exit
PB: predicated region body
PF: predicated region fallthrough
CT: control target
= control target key end

     0   :  { %v1151_v1 = vmov 0   ;;  %s1424_s1 = inlined_call_operand.vmem [shape: bf16[128,128], index: 1, kind: input, shape index: {}, may-alias: {1,2}]   ;;  %s1425_s0 = inlined_call_operand.vmem [shape: s8[128,128], index: 0, kind: input, shape index: {}]   ;;  %s1426_s3 = inlined_call_operand.vmem [shape: f32[128,1], index: 3, kind: input, shape index: {}]   ;;  %s1427_s4 = inlined_call_operand.vmem [shape: bf16[256,128], index: 4, kind: input, shape index: {}]   ;;  %s1428_s2 = inlined_call_operand.vmem [shape: bf16[128,128], index: 2, kind: input, shape index: {}, may-alias: {1,2}]   ;;  %s1429_s5 = inlined_call_operand.vmem [shape: f32[1,128], index: 5, kind: input, shape index: {}]   ;;  %s1430_s6 = inlined_call_operand.vmem [shape: bf16[128,128], index: 6, kind: output, shape index: {}]  }
   0x1   :  { %v1119_v0 = vld [vmem:[%s1424_s1 + $0x38] sm:$0xff]   ;;  %1117 = vset.pattern.permute.xlu0 %v1151_v1  ;;  %1118 = vset.pattern.permute.xlu1 %v1151_v1  ;;  %v1120_v2 = vld [vmem:[%s1424_s1 + $0x30] sm:$0xff]   ;;  %v1121_v3 = vld [vmem:[%s1424_s1 + $0x28] sm:$0xff]  }
   0x2   :  { %1068 = vmatprep.subr.bf16.mxu0 %v1119_v0  ;;  %v1122_v4 = vld [vmem:[%s1424_s1 + $0x20] sm:$0xff]   ;;  %v1123_v10 = vld [vmem:[%s1424_s1 + $0x18] sm:$0xff]   ;;  %v358_v12 = vld [vmem:[%s1426_s3 + $0x30] sm:$0xff] }
   0x3   :  { %1069 = vmatpush3.bf16.msra.mxu0 %v1119_v0  ;;  %v44_v5 = vld [vmem:[%s1425_s0] sm:$0x3]  ;;  %v45_v6 = vld [vmem:[%s1425_s0 + $0x2] sm:$0x3]  ;;  %400 = vperm.xlu1 %1118, %v358_v12   ;;  %v357_v13 = vld [vmem:[%s1426_s3 + $0x28] sm:$0xff] }
   0x4   :  { %1070 = vmatprep.subr.bf16.mxu0 %v1120_v2  ;;  %v60_v7 = vunpack.c.l.s8.bf16 %v44_v5  ;;  %v61_v8 = vunpack.c.l.s8.bf16 %v45_v6  ;;  %v356_v11 = vld [vmem:[%s1426_s3 + $0x20] sm:$0xff]  ;;  %v359_v14 = vld [vmem:[%s1426_s3 + $0x38] sm:$0xff]  ;;  %v1124_v15 = vld [vmem:[%s1424_s1 + $0x10] sm:$0xff]  }
   0x5   :  { %390 = vperm.xlu0 %1117, %v356_v11   ;;  %v360_v16 = vld [vmem:[%s1426_s3 + $0x40] sm:$0xff]  ;;  %v361_v17 = vld [vmem:[%s1426_s3 + $0x48] sm:$0xff]  ;;  %v1127_v18 = vld [vmem:[%s1427_s4 + $0x78] sm:$0xff]  }
   0x6   :  { %v868_v9 = vcombine.low %v60_v7, %v61_v8  ;;  %v1125_v19 = vld [vmem:[%s1424_s1 + $0x8] sm:$0xff]   ;;  %v46_v20 = vld [vmem:[%s1425_s0 + $0x4] sm:$0x3]  ;;  %v47_v21 = vld [vmem:[%s1425_s0 + $0x6] sm:$0x3]  ;;  %1100 = vmatprep.subr.bf16.mxu1 %v1127_v18 }
   0x7   :  { %1071 = vmatpush3.bf16.msra.mxu0 %v1120_v2  ;;  %405 = vperm.xlu1 %1118, %v359_v14   ;;  %v362_v22 = vld [vmem:[%s1426_s3 + $0x50] sm:$0xff]  ;;  %v1128_v23 = vld [vmem:[%s1427_s4 + $0x38] sm:$0xff]   ;;  %v1126_v24 = vld [vmem:[%s1424_s1] sm:$0xff]   ;;  %v62_v31 = vunpack.c.l.s8.bf16 %v46_v20  ;;  %v63_v32 = vunpack.c.l.s8.bf16 %v47_v21 }
   0x8   :  { %1072 = vmatprep.subr.bf16.mxu0 %v1121_v3  ;;  %1084 = vmatprep.mubr.bf16.mxu0 %v868_v9  ;;  %v48_v25 = vld [vmem:[%s1425_s0 + $0x8] sm:$0x3]  ;;  %v1129_v26 = vld [vmem:[%s1427_s4 + $0x70] sm:$0xff]   ;;  %v363_v27 = vld [vmem:[%s1426_s3 + $0x58] sm:$0xff] }
   0x9   :  { %395 = vperm.xlu0 %1117, %v357_v13   ;;  %1108 = vmatpush3.bf16.msra.mxu1 %v1128_v23  ;;  %v49_v28 = vld [vmem:[%s1425_s0 + $0xa] sm:$0x3]  ;;  %v352_v29 = vld [vmem:[%s1426_s3] sm:$0xff]  ;;  %v1130_v30 = vld [vmem:[%s1427_s4 + $0x30] sm:$0xff]   ;;  %v64_v34 = vunpack.c.l.s8.bf16 %v48_v25  ;;  %v869_v42 = vcombine.low %v62_v31, %v63_v32 }
   0xa   :  { %1101 = vmatprep.subr.bf16.mxu1 %v1129_v26  ;;  %v1131_v33 = vld [vmem:[%s1427_s4 + $0x68] sm:$0xff]   ;;  %v65_v35 = vunpack.c.l.s8.bf16 %v49_v28  ;;  %v364_v39 = vld [vmem:[%s1426_s3 + $0x60] sm:$0xff]  ;;  %v52_v43 = vld [vmem:[%s1425_s0 + $0x10] sm:$0x3] }
   0xb   :  { %1073 = vmatpush3.bf16.msra.mxu0 %v1121_v3  ;;  %415 = vperm.xlu1 %1118, %v361_v17   ;;  %v353_v36 = vld [vmem:[%s1426_s3 + $0x8] sm:$0xff]  ;;  %v1133_v41 = vld [vmem:[%s1427_s4 + $0x60] sm:$0xff]   ;;  %v53_v44 = vld [vmem:[%s1425_s0 + $0x12] sm:$0x3]  ;;  %v68_v50 = vunpack.c.l.s8.bf16 %v52_v43 }
   0xc   :  { %1074 = vmatprep.subr.bf16.mxu0 %v1122_v4  ;;  %v50_v37 = vld [vmem:[%s1425_s0 + $0xc] sm:$0x3]  ;;  %v51_v38 = vld [vmem:[%s1425_s0 + $0xe] sm:$0x3]  ;;  %v870_v46 = vcombine.low %v64_v34, %v65_v35  ;;  %v1134_v49 = vld [vmem:[%s1427_s4 + $0x20] sm:$0xff]   ;;  %v69_v51 = vunpack.c.l.s8.bf16 %v53_v44 }
   0xd   :  { %410 = vperm.xlu0 %1117, %v360_v16   ;;  %1109 = vmatpush3.bf16.msra.mxu1 %v1130_v30  ;;  %v1132_v40 = vld [vmem:[%s1427_s4 + $0x28] sm:$0xff]   ;;  %v66_v47 = vunpack.c.l.s8.bf16 %v50_v37  ;;  %v67_v48 = vunpack.c.l.s8.bf16 %v51_v38  ;;  %v354_v52 = vld [vmem:[%s1426_s3 + $0x10] sm:$0xff]  ;;  %v1135_v53 = vld [vmem:[%s1427_s4 + $0x58] sm:$0xff]  }
   0xe   :  { %1102 = vmatprep.subr.bf16.mxu1 %v1131_v33  ;;  %v365_v45 = vld [vmem:[%s1426_s3 + $0x68] sm:$0xff]  ;;  %v355_v54 = vld [vmem:[%s1426_s3 + $0x18] sm:$0xff]  ;;  %v54_v56 = vld [vmem:[%s1425_s0 + $0x14] sm:$0x3]  ;;  %v872_v58 = vcombine.low %v68_v50, %v69_v51 }
   0xf   :  { %1075 = vmatpush3.bf16.msra.mxu0 %v1122_v4  ;;  %425 = vperm.xlu1 %1118, %v363_v27   ;;  %v871_v55 = vcombine.low %v66_v47, %v67_v48  ;;  %v1136_v57 = vld [vmem:[%s1427_s4 + $0x18] sm:$0xff]   ;;  %v55_v59 = vld [vmem:[%s1425_s0 + $0x16] sm:$0x3]  ;;  %v70_v1 = vunpack.c.l.s8.bf16 %v54_v56  ;;  %v1139_v13 = vld [vmem:[%s1427_s4 + $0x48] sm:$0xff]  }
  0x10   :  { %1076 = vmatprep.subr.bf16.mxu0 %v1123_v10  ;;  %v366_v60 = vld [vmem:[%s1426_s3 + $0x70] sm:$0xff]  ;;  %v56_v62 = vld [vmem:[%s1425_s0 + $0x18] sm:$0x3]  ;;  %v57_v63 = vld [vmem:[%s1425_s0 + $0x1a] sm:$0x3]  ;;  %v71_v2 = vunpack.c.l.s8.bf16 %v55_v59 }
  0x11   :  { %420 = vperm.xlu0 %1117, %v362_v22   ;;  %1110 = vmatpush3.bf16.msra.mxu1 %v1132_v40  ;;  %v1137_v61 = vld [vmem:[%s1427_s4 + $0x50] sm:$0xff]   ;;  %v367_v0 = vld [vmem:[%s1426_s3 + $0x78] sm:$0xff]  ;;  %v72_v3 = vunpack.c.l.s8.bf16 %v56_v62  ;;  %v73_v4 = vunpack.c.l.s8.bf16 %v57_v63  ;;  %v1140_v14 = vld [vmem:[%s1427_s4 + $0x8] sm:$0xff]  }
  0x12   :  { %1103 = vmatprep.subr.bf16.mxu1 %v1133_v41  ;;  %v873_v5 = vcombine.low %v70_v1, %v71_v2  ;;  %v58_v7 = vld [vmem:[%s1425_s0 + $0x1c] sm:$0x3]  ;;  %v59_v8 = vld [vmem:[%s1425_s0 + $0x1e] sm:$0x3]  ;;  %v1138_v12 = vld [vmem:[%s1427_s4 + $0x10] sm:$0xff]  }
  0x13   :  { %1077 = vmatpush3.bf16.msra.mxu0 %v1123_v10  ;;  %375 = vperm.xlu1 %1118, %v353_v36   ;;  %v874_v6 = vcombine.low %v72_v3, %v73_v4  ;;  %v74_v9 = vunpack.c.l.s8.bf16 %v58_v7  ;;  %v75_v10 = vunpack.c.l.s8.bf16 %v59_v8  ;;  %v1142_v16 = vld [vmem:[%s1427_s4] sm:$0xff]   ;;  %v1144_v38 = vld [vmem:[%s1428_s2 + $0x8] sm:$0xff]   ;;  %v1146_v50 = vld [vmem:[%s1428_s2 + $0x18] sm:$0xff]  }
  0x14   :  { %1078 = vmatprep.subr.bf16.mxu0 %v1124_v15  ;;  %v1143_v17 = vld [vmem:[%s1428_s2] sm:$0xff]   ;;  %v1148_v63 = vld [vmem:[%s1428_s2 + $0x28] sm:$0xff]  }
  0x15   :  { %370 = vperm.xlu0 %1117, %v352_v29   ;;  %1111 = vmatpush3.bf16.msra.mxu1 %v1134_v49  ;;  %v875_v11 = vcombine.low %v74_v9, %v75_v10  ;;  %v1150_v10 = vld [vmem:[%s1428_s2 + $0x38] sm:$0xff]  }
  0x16   :  { %1104 = vmatprep.subr.bf16.mxu1 %v1135_v53 }
  0x17   :  { %1079 = vmatpush3.bf16.msra.mxu0 %v1124_v15  ;;  %435 = vperm.xlu1 %1118, %v365_v45   ;;  %v1141_v15 = vld [vmem:[%s1427_s4 + $0x40] sm:$0xff]  }
  0x18   :  { %1080 = vmatprep.subr.bf16.mxu0 %v1125_v19 }
  0x19   :  { %430 = vperm.xlu0 %1117, %v364_v39   ;;  %1112 = vmatpush3.bf16.msra.mxu1 %v1136_v57 }
  0x1a   :  { %1105 = vmatprep.subr.bf16.mxu1 %v1137_v61 }
  0x1b   :  { %1081 = vmatpush3.bf16.msra.mxu0 %v1125_v19  ;;  %385 = vperm.xlu1 %1118, %v355_v54  }
  0x1c   :  { %1082 = vmatprep.subr.bf16.mxu0 %v1126_v24 }
  0x1d   :  { %380 = vperm.xlu0 %1117, %v354_v52   ;;  %1113 = vmatpush3.bf16.msra.mxu1 %v1138_v12 }
  0x1e   :  { %1106 = vmatprep.subr.bf16.mxu1 %v1139_v13 }
  0x1f   :  { %1083 = vmatpush3.bf16.msra.mxu0 %v1126_v24  ;;  %445 = vperm.xlu1 %1118, %v367_v0  }
  0x20   :  { %1004 = vmatprep.subr.bf16.mxu0 %v1127_v18  ;;  %v1145_v18 = vld [vmem:[%s1428_s2 + $0x10] sm:$0xff]  }
  0x21   :  { %440 = vperm.xlu0 %1117, %v366_v60   ;;  %1114 = vmatpush3.bf16.msra.mxu1 %v1140_v14 }
  0x22   :  { %1085 = vmatmul.mubr.bf16.vlgmr.msra.gmra.mxu0 %v869_v42  ;;  %1107 = vmatprep.subr.bf16.mxu1 %v1141_v15 }
  0x23   :  { %1088 = vmatprep.mubr.bf16.mxu0 %v870_v46  ;;  %1005 = vmatpush3.bf16.msra.mxu0 %v1128_v23 }
  0x24   :  { %1006 = vmatprep.subr.bf16.mxu0 %v1129_v26  ;;  %719 = vmatprep.mubr.bf16.mxu1 %v1145_v18 }
  0x25   :  { %1115 = vmatpush3.bf16.msra.mxu1 %v1142_v16 }
  0x27   :  { %1007 = vmatpush3.bf16.msra.mxu0 %v1130_v30 }
  0x28   :  { %1008 = vmatprep.subr.bf16.mxu0 %v1131_v33 }
  0x2a   :  { %1089 = vmatmul.mubr.bf16.gmra.mxu0 %v871_v55 }
  0x2b   :  { %1092 = vmatprep.mubr.bf16.mxu0 %v872_v58  ;;  %1009 = vmatpush3.bf16.msra.mxu0 %v1132_v40 }
  0x2c   :  { %1010 = vmatprep.subr.bf16.mxu0 %v1133_v41 }
  0x2f   :  { %1011 = vmatpush3.bf16.msra.mxu0 %v1134_v49 }
  0x30   :  { %1012 = vmatprep.subr.bf16.mxu0 %v1135_v53 }
  0x32   :  { %1093 = vmatmul.mubr.bf16.gmra.mxu0 %v873_v5  ;;  %v1149_v5 = vld [vmem:[%s1428_s2 + $0x30] sm:$0xff]  }
  0x33   :  { %1096 = vmatprep.mubr.bf16.mxu0 %v874_v6  ;;  %1013 = vmatpush3.bf16.msra.mxu0 %v1136_v57  ;;  %v1147_v57 = vld [vmem:[%s1428_s2 + $0x20] sm:$0xff]  }
  0x34   :  { %1014 = vmatprep.subr.bf16.mxu0 %v1137_v61 }
  0x37   :  { %1015 = vmatpush3.bf16.msra.mxu0 %v1138_v12 }
  0x38   :  { %1016 = vmatprep.subr.bf16.mxu0 %v1139_v13 }
  0x3a   :  { %1097 = vmatmul.mubr.bf16.gmra.mxu0 %v875_v11 }
  0x3b   :  { %1017 = vmatpush3.bf16.msra.mxu0 %v1140_v14  ;;  %703 = vmatprep.mubr.bf16.mxu0 %v1143_v17 }
  0x3c   :  { %1018 = vmatprep.subr.bf16.mxu0 %v1141_v15 }
  0x3f   :  { %1019 = vmatpush3.bf16.msra.mxu0 %v1142_v16 }
  0x7e   :  { %v401_v19 = vpop.permute.xlu1 %400 }
  0x80   :  { %v391_v20 = vpop.permute.xlu0 %390 }
  0x82   :  { %v406_v21 = vpop.permute.xlu1 %405 }
  0x84   :  { %v396_v22 = vpop.permute.xlu0 %395 }
  0x86   :  { %v416_v23 = vpop.permute.xlu1 %415 }
  0x88   :  { %v411_v24 = vpop.permute.xlu0 %410 }
  0x8a   :  { %v426_v25 = vpop.permute.xlu1 %425 }
  0x8c   :  { %v421_v26 = vpop.permute.xlu0 %420 }
  0x8e   :  { %v376_v27 = vpop.permute.xlu1 %375 }
  0x90   :  { %v371_v28 = vpop.permute.xlu0 %370 }
  0x92   :  { %v436_v31 = vpop.permute.xlu1 %435 }
  0x94   :  { %v431_v33 = vpop.permute.xlu0 %430 }
  0x96   :  { %v386_v40 = vpop.permute.xlu1 %385 }
  0x98   :  { %v381_v42 = vpop.permute.xlu0 %380 }
  0x9a   :  { %v446_v12 = vpop.permute.xlu1 %445 }
  0x9c   :  { %v441_v14 = vpop.permute.xlu0 %440 }
  0xe2   :  { %v1086_v29 = vpop.f32.mrf.mxu0 }
  0xe3   :  { %v450_v46 = vmul.f32 %v1086_v29, %v381_v42 }
  0xe4   :  { %v238_v30 = vpop.f32.mrf.mxu0 }
  0xe5   :  { %v448_v35 = vmul.f32 %v371_v28, %v238_v30 }
  0xe6   :  { %v1087_v32 = vpop.f32.mrf.mxu0 }
  0xe7   :  { %v451_v44 = vmul.f32 %v1087_v32, %v386_v40 }
  0xe8   :  { %v241_v34 = vpop.f32.mrf.mxu0 }
  0xe9   :  { %v449_v36 = vmul.f32 %v376_v27, %v241_v34  ;;  %v465_v51 = vpack.c.bf16 %v451_v44, %v450_v46 }
  0xea   :  { %v1090_v37 = vpop.f32.mrf.mxu0 }
  0xeb   :  { %v464_v39 = vpack.c.bf16 %v449_v36, %v448_v35  ;;  %v454_v56 = vmul.f32 %v1090_v37, %v401_v19 }
  0xec   :  { %v254_v41 = vpop.f32.mrf.mxu0 }
  0xed   :  { %704 = vmatmul.mubr.bf16.vlgmr.msra.gmra.mxu0 %v464_v39  ;;  %v452_v47 = vmul.f32 %v391_v20, %v254_v41  ;;  %v1382_v20 = vld [vmem:[%s1429_s5] ss:$0 sm:$0xff] }
  0xee   :  { %v1091_v43 = vpop.f32.mrf.mxu0  ;;  %711 = vmatprep.mubr.bf16.mxu0 %v1144_v38 }
  0xef   :  { %v455_v54 = vmul.f32 %v1091_v43, %v406_v21 }
  0xf0   :  { %v257_v45 = vpop.f32.mrf.mxu0 }
  0xf1   :  { %v453_v48 = vmul.f32 %v396_v22, %v257_v45  ;;  %v467_v58 = vpack.c.bf16 %v455_v54, %v454_v56 }
  0xf2   :  { %v1094_v49 = vpop.f32.mrf.mxu0 }
  0xf3   :  { %v466_v52 = vpack.c.bf16 %v453_v48, %v452_v47  ;;  %v458_v4 = vmul.f32 %v1094_v49, %v421_v26 }
  0xf4   :  { %v270_v53 = vpop.f32.mrf.mxu0 }
  0xf5   :  { %712 = vmatmul.mubr.bf16.gmra.mxu0 %v465_v51  ;;  %720 = vmatmul.mubr.bf16.vlgmr.msra.gmra.mxu1 %v466_v52  ;;  %v456_v62 = vmul.f32 %v411_v24, %v270_v53 }
  0xf6   :  { %727 = vmatprep.mubr.bf16.mxu1 %v1146_v50  ;;  %v1095_v55 = vpop.f32.mrf.mxu0 }
  0xf7   :  { %v459_v2 = vmul.f32 %v1095_v55, %v426_v25 }
  0xf8   :  { %v273_v59 = vpop.f32.mrf.mxu0 }
  0xf9   :  { %v457_v60 = vmul.f32 %v416_v23, %v273_v59  ;;  %v469_v6 = vpack.c.bf16 %v459_v2, %v458_v4 }
  0xfa   :  { %v1098_v61 = vpop.f32.mrf.mxu0 }
  0xfb   :  { %v468_v0 = vpack.c.bf16 %v457_v60, %v456_v62  ;;  %v462_v15 = vmul.f32 %v1098_v61, %v441_v14 }
  0xfc   :  { %v286_v1 = vpop.f32.mrf.mxu0 }
  0xfd   :  { %728 = vmatmul.mubr.bf16.gmra.mxu1 %v467_v58  ;;  %v460_v9 = vmul.f32 %v431_v33, %v286_v1 }
  0xfe   :  { %735 = vmatprep.mubr.bf16.mxu1 %v1147_v57  ;;  %v1099_v3 = vpop.f32.mrf.mxu0 }
  0xff   :  { %v463_v13 = vmul.f32 %v1099_v3, %v446_v12 }
 0x100   :  { %v289_v7 = vpop.f32.mrf.mxu0 }
 0x101   :  { %v461_v8 = vmul.f32 %v436_v31, %v289_v7  ;;  %v471_v16 = vpack.c.bf16 %v463_v13, %v462_v15 }
 0x103   :  { %v470_v11 = vpack.c.bf16 %v461_v8, %v460_v9 }
 0x105   :  { %736 = vmatmul.mubr.bf16.gmra.mxu1 %v468_v0 }
 0x106   :  { %743 = vmatprep.mubr.bf16.mxu1 %v1148_v63 }
 0x10d   :  { %744 = vmatmul.mubr.bf16.gmra.mxu1 %v469_v6 }
 0x10e   :  { %751 = vmatprep.mubr.bf16.mxu1 %v1149_v5 }
 0x115   :  { %752 = vmatmul.mubr.bf16.gmra.mxu1 %v470_v11 }
 0x116   :  { %759 = vmatprep.mubr.bf16.mxu1 %v1150_v10 }
 0x11d   :  { %760 = vmatmul.mubr.bf16.gmra.mxu1 %v471_v16 }
 0x1ad   :  { %v1020_v17 = vpop.f32.mrf.mxu0 }
 0x1af   :  { %v1021_v18 = vpop.f32.mrf.mxu0 }
 0x1b0   :  { %v1022_v19 = vadd.f32 %v1021_v18, %v1020_v17 }
 0x1b1   :  { %v1023_v21 = vpop.f32.mrf.mxu0 }
 0x1b2   :  { %v706_v23 = vadd.f32 %v1022_v19, %v1382_v20 }
 0x1b3   :  { %v1024_v22 = vpop.f32.mrf.mxu0 }
 0x1b4   :  { %v1025_v24 = vadd.f32 %v1024_v22, %v1023_v21  ;;  %v768_v30 = vmax.f32 %v706_v23, 0.0 }
 0x1b5   :  { %v1026_v25 = vpop.f32.mrf.mxu0  ;;  %v1032_v26 = vpop.f32.mrf.mxu1 }
 0x1b6   :  { %v709_v27 = vadd.f32 %v1025_v24, %v1382_v20 }
 0x1b7   :  { %v1027_v28 = vpop.f32.mrf.mxu0  ;;  %v1033_v29 = vpop.f32.mrf.mxu1 }
 0x1b8   :  { %v769_v31 = vmax.f32 %v709_v27, 0.0  ;;  %v1028_v32 = vadd.f32 %v1027_v28, %v1026_v25  ;;  %v1034_v33 = vadd.f32 %v1033_v29, %v1032_v26 }
 0x1b9   :  { %v1029_v34 = vpop.f32.mrf.mxu0  ;;  %v1035_v35 = vpop.f32.mrf.mxu1 }
 0x1ba   :  { %v944_v36 = vpack.c.bf16 %v769_v31, %v768_v30  ;;  %v714_v37 = vadd.f32 %v1028_v32, %v1382_v20  ;;  %v722_v40 = vadd.f32 %v1034_v33, %v1382_v20 }
 0x1bb   :  { %v1030_v38 = vpop.f32.mrf.mxu0  ;;  %v1036_v39 = vpop.f32.mrf.mxu1 }
 0x1bc   :  { %945 = vst [vmem:[%s1430_s6] sm:$0xff] %v944_v36   ;;  %v1031_v41 = vadd.f32 %v1030_v38, %v1029_v34  ;;  %v1037_v42 = vadd.f32 %v1036_v39, %v1035_v35  ;;  %v770_v46 = vmax.f32 %v714_v37, 0.0  ;;  %v772_v48 = vmax.f32 %v722_v40, 0.0 }
 0x1bd   :  { %v1038_v43 = vpop.f32.mrf.mxu1 }
 0x1be   :  { %v717_v44 = vadd.f32 %v1031_v41, %v1382_v20  ;;  %v725_v45 = vadd.f32 %v1037_v42, %v1382_v20 }
 0x1bf   :  { %v1039_v47 = vpop.f32.mrf.mxu1 }
 0x1c0   :  { %v771_v49 = vmax.f32 %v717_v44, 0.0  ;;  %v773_v50 = vmax.f32 %v725_v45, 0.0  ;;  %v1040_v51 = vadd.f32 %v1039_v47, %v1038_v43 }
 0x1c1   :  { %v1041_v52 = vpop.f32.mrf.mxu1 }
 0x1c2   :  { %v949_v53 = vpack.c.bf16 %v771_v49, %v770_v46  ;;  %v954_v54 = vpack.c.bf16 %v773_v50, %v772_v48  ;;  %v730_v56 = vadd.f32 %v1040_v51, %v1382_v20 }
 0x1c3   :  { %v1042_v55 = vpop.f32.mrf.mxu1 }
 0x1c4   :  { %981 = vst [vmem:[%s1430_s6 + $0x8] sm:$0xff] %v949_v53   ;;  %982 = vst [vmem:[%s1430_s6 + $0x10] sm:$0xff] %v954_v54   ;;  %v1043_v57 = vadd.f32 %v1042_v55, %v1041_v52  ;;  %v774_v61 = vmax.f32 %v730_v56, 0.0 }
 0x1c5   :  { %v1044_v58 = vpop.f32.mrf.mxu1 }
 0x1c6   :  { %v733_v59 = vadd.f32 %v1043_v57, %v1382_v20 }
 0x1c7   :  { %v1045_v60 = vpop.f32.mrf.mxu1 }
 0x1c8   :  { %v775_v62 = vmax.f32 %v733_v59, 0.0  ;;  %v1046_v63 = vadd.f32 %v1045_v60, %v1044_v58 }
 0x1c9   :  { %v1047_v0 = vpop.f32.mrf.mxu1 }
 0x1ca   :  { %v959_v1 = vpack.c.bf16 %v775_v62, %v774_v61  ;;  %v738_v3 = vadd.f32 %v1046_v63, %v1382_v20 }
 0x1cb   :  { %v1048_v2 = vpop.f32.mrf.mxu1 }
 0x1cc   :  { %983 = vst [vmem:[%s1430_s6 + $0x18] sm:$0xff] %v959_v1   ;;  %v1049_v4 = vadd.f32 %v1048_v2, %v1047_v0  ;;  %v776_v8 = vmax.f32 %v738_v3, 0.0 }
 0x1cd   :  { %v1050_v5 = vpop.f32.mrf.mxu1 }
 0x1ce   :  { %v741_v6 = vadd.f32 %v1049_v4, %v1382_v20 }
 0x1cf   :  { %v1051_v7 = vpop.f32.mrf.mxu1 }
 0x1d0   :  { %v777_v9 = vmax.f32 %v741_v6, 0.0  ;;  %v1052_v10 = vadd.f32 %v1051_v7, %v1050_v5 }
 0x1d1   :  { %v1053_v11 = vpop.f32.mrf.mxu1 }
 0x1d2   :  { %v964_v12 = vpack.c.bf16 %v777_v9, %v776_v8  ;;  %v746_v14 = vadd.f32 %v1052_v10, %v1382_v20 }
 0x1d3   :  { %v1054_v13 = vpop.f32.mrf.mxu1 }
 0x1d4   :  { %984 = vst [vmem:[%s1430_s6 + $0x20] sm:$0xff] %v964_v12   ;;  %v1055_v15 = vadd.f32 %v1054_v13, %v1053_v11  ;;  %v778_v19 = vmax.f32 %v746_v14, 0.0 }
 0x1d5   :  { %v1056_v16 = vpop.f32.mrf.mxu1 }
 0x1d6   :  { %v749_v17 = vadd.f32 %v1055_v15, %v1382_v20 }
 0x1d7   :  { %v1057_v18 = vpop.f32.mrf.mxu1 }
 0x1d8   :  { %v779_v21 = vmax.f32 %v749_v17, 0.0  ;;  %v1058_v22 = vadd.f32 %v1057_v18, %v1056_v16 }
 0x1d9   :  { %v1059_v23 = vpop.f32.mrf.mxu1 }
 0x1da   :  { %v969_v24 = vpack.c.bf16 %v779_v21, %v778_v19  ;;  %v754_v26 = vadd.f32 %v1058_v22, %v1382_v20 }
 0x1db   :  { %v1060_v25 = vpop.f32.mrf.mxu1 }
 0x1dc   :  { %985 = vst [vmem:[%s1430_s6 + $0x28] sm:$0xff] %v969_v24   ;;  %v1061_v27 = vadd.f32 %v1060_v25, %v1059_v23  ;;  %v780_v31 = vmax.f32 %v754_v26, 0.0 }
 0x1dd   :  { %v1062_v28 = vpop.f32.mrf.mxu1 }
 0x1de   :  { %v757_v29 = vadd.f32 %v1061_v27, %v1382_v20 }
 0x1df   :  { %v1063_v30 = vpop.f32.mrf.mxu1 }
 0x1e0   :  { %v781_v32 = vmax.f32 %v757_v29, 0.0  ;;  %v1064_v33 = vadd.f32 %v1063_v30, %v1062_v28 }
 0x1e1   :  { %v1065_v34 = vpop.f32.mrf.mxu1 }
 0x1e2   :  { %v974_v35 = vpack.c.bf16 %v781_v32, %v780_v31  ;;  %v762_v37 = vadd.f32 %v1064_v33, %v1382_v20 }
 0x1e3   :  { %v1066_v36 = vpop.f32.mrf.mxu1 }
 0x1e4   :  { %986 = vst [vmem:[%s1430_s6 + $0x30] sm:$0xff] %v974_v35   ;;  %v1067_v38 = vadd.f32 %v1066_v36, %v1065_v34  ;;  %v782_v40 = vmax.f32 %v762_v37, 0.0 }
 0x1e6   :  { %v765_v39 = vadd.f32 %v1067_v38, %v1382_v20 }
 0x1e8   :  { %v783_v41 = vmax.f32 %v765_v39, 0.0 }
 0x1ea   :  { %v979_v42 = vpack.c.bf16 %v783_v41, %v782_v40 }
 0x1ec   :  { %987 = vst [vmem:[%s1430_s6 + $0x38] sm:$0xff] %v979_v42  }

// kernel: gnn_encoder.3
= control target key start
LH: loop header
LB: loop body
LE: loop exit
PB: predicated region body
PF: predicated region fallthrough
CT: control target
= control target key end

     0   :  { %v1135_v1 = vmov 0   ;;  %s1408_s1 = inlined_call_operand.vmem [shape: bf16[128,128], index: 1, kind: input, shape index: {}, may-alias: {1,2}]   ;;  %s1409_s0 = inlined_call_operand.vmem [shape: s8[128,128], index: 0, kind: input, shape index: {}]   ;;  %s1410_s3 = inlined_call_operand.vmem [shape: f32[128,1], index: 3, kind: input, shape index: {}]   ;;  %s1411_s4 = inlined_call_operand.vmem [shape: bf16[256,128], index: 4, kind: input, shape index: {}]   ;;  %s1412_s2 = inlined_call_operand.vmem [shape: bf16[128,128], index: 2, kind: input, shape index: {}, may-alias: {1,2}]   ;;  %s1413_s5 = inlined_call_operand.vmem [shape: f32[1,128], index: 5, kind: input, shape index: {}]   ;;  %s1414_s6 = inlined_call_operand.vmem [shape: bf16[128,128], index: 6, kind: output, shape index: {}]  }
   0x1   :  { %v1103_v0 = vld [vmem:[%s1408_s1 + $0x38] sm:$0xff]   ;;  %1101 = vset.pattern.permute.xlu0 %v1135_v1  ;;  %1102 = vset.pattern.permute.xlu1 %v1135_v1  ;;  %v1104_v2 = vld [vmem:[%s1408_s1 + $0x30] sm:$0xff]   ;;  %v1105_v3 = vld [vmem:[%s1408_s1 + $0x28] sm:$0xff]  }
   0x2   :  { %1052 = vmatprep.subr.bf16.mxu0 %v1103_v0  ;;  %v1106_v4 = vld [vmem:[%s1408_s1 + $0x20] sm:$0xff]   ;;  %v1107_v10 = vld [vmem:[%s1408_s1 + $0x18] sm:$0xff]   ;;  %v358_v12 = vld [vmem:[%s1410_s3 + $0x30] sm:$0xff] }
   0x3   :  { %1053 = vmatpush3.bf16.msra.mxu0 %v1103_v0  ;;  %v44_v5 = vld [vmem:[%s1409_s0] sm:$0x3]  ;;  %v45_v6 = vld [vmem:[%s1409_s0 + $0x2] sm:$0x3]  ;;  %400 = vperm.xlu1 %1102, %v358_v12   ;;  %v357_v13 = vld [vmem:[%s1410_s3 + $0x28] sm:$0xff] }
   0x4   :  { %1054 = vmatprep.subr.bf16.mxu0 %v1104_v2  ;;  %v60_v7 = vunpack.c.l.s8.bf16 %v44_v5  ;;  %v61_v8 = vunpack.c.l.s8.bf16 %v45_v6  ;;  %v356_v11 = vld [vmem:[%s1410_s3 + $0x20] sm:$0xff]  ;;  %v359_v14 = vld [vmem:[%s1410_s3 + $0x38] sm:$0xff]  ;;  %v1108_v15 = vld [vmem:[%s1408_s1 + $0x10] sm:$0xff]  }
   0x5   :  { %390 = vperm.xlu0 %1101, %v356_v11   ;;  %v360_v16 = vld [vmem:[%s1410_s3 + $0x40] sm:$0xff]  ;;  %v361_v17 = vld [vmem:[%s1410_s3 + $0x48] sm:$0xff]  ;;  %v1111_v18 = vld [vmem:[%s1411_s4 + $0x78] sm:$0xff]  }
   0x6   :  { %v852_v9 = vcombine.low %v60_v7, %v61_v8  ;;  %v1109_v19 = vld [vmem:[%s1408_s1 + $0x8] sm:$0xff]   ;;  %v46_v20 = vld [vmem:[%s1409_s0 + $0x4] sm:$0x3]  ;;  %v47_v21 = vld [vmem:[%s1409_s0 + $0x6] sm:$0x3]  ;;  %1084 = vmatprep.subr.bf16.mxu1 %v1111_v18 }
   0x7   :  { %1055 = vmatpush3.bf16.msra.mxu0 %v1104_v2  ;;  %405 = vperm.xlu1 %1102, %v359_v14   ;;  %v362_v22 = vld [vmem:[%s1410_s3 + $0x50] sm:$0xff]  ;;  %v1112_v23 = vld [vmem:[%s1411_s4 + $0x38] sm:$0xff]   ;;  %v1110_v24 = vld [vmem:[%s1408_s1] sm:$0xff]   ;;  %v62_v31 = vunpack.c.l.s8.bf16 %v46_v20  ;;  %v63_v32 = vunpack.c.l.s8.bf16 %v47_v21 }
   0x8   :  { %1056 = vmatprep.subr.bf16.mxu0 %v1105_v3  ;;  %1068 = vmatprep.mubr.bf16.mxu0 %v852_v9  ;;  %v48_v25 = vld [vmem:[%s1409_s0 + $0x8] sm:$0x3]  ;;  %v1113_v26 = vld [vmem:[%s1411_s4 + $0x70] sm:$0xff]   ;;  %v363_v27 = vld [vmem:[%s1410_s3 + $0x58] sm:$0xff] }
   0x9   :  { %395 = vperm.xlu0 %1101, %v357_v13   ;;  %1092 = vmatpush3.bf16.msra.mxu1 %v1112_v23  ;;  %v49_v28 = vld [vmem:[%s1409_s0 + $0xa] sm:$0x3]  ;;  %v352_v29 = vld [vmem:[%s1410_s3] sm:$0xff]  ;;  %v1114_v30 = vld [vmem:[%s1411_s4 + $0x30] sm:$0xff]   ;;  %v64_v34 = vunpack.c.l.s8.bf16 %v48_v25  ;;  %v853_v42 = vcombine.low %v62_v31, %v63_v32 }
   0xa   :  { %1085 = vmatprep.subr.bf16.mxu1 %v1113_v26  ;;  %v1115_v33 = vld [vmem:[%s1411_s4 + $0x68] sm:$0xff]   ;;  %v65_v35 = vunpack.c.l.s8.bf16 %v49_v28  ;;  %v364_v39 = vld [vmem:[%s1410_s3 + $0x60] sm:$0xff]  ;;  %v52_v43 = vld [vmem:[%s1409_s0 + $0x10] sm:$0x3] }
   0xb   :  { %1057 = vmatpush3.bf16.msra.mxu0 %v1105_v3  ;;  %415 = vperm.xlu1 %1102, %v361_v17   ;;  %v353_v36 = vld [vmem:[%s1410_s3 + $0x8] sm:$0xff]  ;;  %v1117_v41 = vld [vmem:[%s1411_s4 + $0x60] sm:$0xff]   ;;  %v53_v44 = vld [vmem:[%s1409_s0 + $0x12] sm:$0x3]  ;;  %v68_v50 = vunpack.c.l.s8.bf16 %v52_v43 }
   0xc   :  { %1058 = vmatprep.subr.bf16.mxu0 %v1106_v4  ;;  %v50_v37 = vld [vmem:[%s1409_s0 + $0xc] sm:$0x3]  ;;  %v51_v38 = vld [vmem:[%s1409_s0 + $0xe] sm:$0x3]  ;;  %v854_v46 = vcombine.low %v64_v34, %v65_v35  ;;  %v1118_v49 = vld [vmem:[%s1411_s4 + $0x20] sm:$0xff]   ;;  %v69_v51 = vunpack.c.l.s8.bf16 %v53_v44 }
   0xd   :  { %410 = vperm.xlu0 %1101, %v360_v16   ;;  %1093 = vmatpush3.bf16.msra.mxu1 %v1114_v30  ;;  %v1116_v40 = vld [vmem:[%s1411_s4 + $0x28] sm:$0xff]   ;;  %v66_v47 = vunpack.c.l.s8.bf16 %v50_v37  ;;  %v67_v48 = vunpack.c.l.s8.bf16 %v51_v38  ;;  %v354_v52 = vld [vmem:[%s1410_s3 + $0x10] sm:$0xff]  ;;  %v1119_v53 = vld [vmem:[%s1411_s4 + $0x58] sm:$0xff]  }
   0xe   :  { %1086 = vmatprep.subr.bf16.mxu1 %v1115_v33  ;;  %v365_v45 = vld [vmem:[%s1410_s3 + $0x68] sm:$0xff]  ;;  %v355_v54 = vld [vmem:[%s1410_s3 + $0x18] sm:$0xff]  ;;  %v54_v56 = vld [vmem:[%s1409_s0 + $0x14] sm:$0x3]  ;;  %v856_v58 = vcombine.low %v68_v50, %v69_v51 }
   0xf   :  { %1059 = vmatpush3.bf16.msra.mxu0 %v1106_v4  ;;  %425 = vperm.xlu1 %1102, %v363_v27   ;;  %v855_v55 = vcombine.low %v66_v47, %v67_v48  ;;  %v1120_v57 = vld [vmem:[%s1411_s4 + $0x18] sm:$0xff]   ;;  %v55_v59 = vld [vmem:[%s1409_s0 + $0x16] sm:$0x3]  ;;  %v70_v1 = vunpack.c.l.s8.bf16 %v54_v56  ;;  %v1123_v13 = vld [vmem:[%s1411_s4 + $0x48] sm:$0xff]  }
  0x10   :  { %1060 = vmatprep.subr.bf16.mxu0 %v1107_v10  ;;  %v366_v60 = vld [vmem:[%s1410_s3 + $0x70] sm:$0xff]  ;;  %v56_v62 = vld [vmem:[%s1409_s0 + $0x18] sm:$0x3]  ;;  %v57_v63 = vld [vmem:[%s1409_s0 + $0x1a] sm:$0x3]  ;;  %v71_v2 = vunpack.c.l.s8.bf16 %v55_v59 }
  0x11   :  { %420 = vperm.xlu0 %1101, %v362_v22   ;;  %1094 = vmatpush3.bf16.msra.mxu1 %v1116_v40  ;;  %v1121_v61 = vld [vmem:[%s1411_s4 + $0x50] sm:$0xff]   ;;  %v367_v0 = vld [vmem:[%s1410_s3 + $0x78] sm:$0xff]  ;;  %v72_v3 = vunpack.c.l.s8.bf16 %v56_v62  ;;  %v73_v4 = vunpack.c.l.s8.bf16 %v57_v63  ;;  %v1124_v14 = vld [vmem:[%s1411_s4 + $0x8] sm:$0xff]  }
  0x12   :  { %1087 = vmatprep.subr.bf16.mxu1 %v1117_v41  ;;  %v857_v5 = vcombine.low %v70_v1, %v71_v2  ;;  %v58_v7 = vld [vmem:[%s1409_s0 + $0x1c] sm:$0x3]  ;;  %v59_v8 = vld [vmem:[%s1409_s0 + $0x1e] sm:$0x3]  ;;  %v1122_v12 = vld [vmem:[%s1411_s4 + $0x10] sm:$0xff]  }
  0x13   :  { %1061 = vmatpush3.bf16.msra.mxu0 %v1107_v10  ;;  %375 = vperm.xlu1 %1102, %v353_v36   ;;  %v858_v6 = vcombine.low %v72_v3, %v73_v4  ;;  %v74_v9 = vunpack.c.l.s8.bf16 %v58_v7  ;;  %v75_v10 = vunpack.c.l.s8.bf16 %v59_v8  ;;  %v1126_v16 = vld [vmem:[%s1411_s4] sm:$0xff]   ;;  %v1128_v38 = vld [vmem:[%s1412_s2 + $0x8] sm:$0xff]   ;;  %v1130_v50 = vld [vmem:[%s1412_s2 + $0x18] sm:$0xff]  }
  0x14   :  { %1062 = vmatprep.subr.bf16.mxu0 %v1108_v15  ;;  %v1127_v17 = vld [vmem:[%s1412_s2] sm:$0xff]   ;;  %v1132_v63 = vld [vmem:[%s1412_s2 + $0x28] sm:$0xff]  }
  0x15   :  { %370 = vperm.xlu0 %1101, %v352_v29   ;;  %1095 = vmatpush3.bf16.msra.mxu1 %v1118_v49  ;;  %v859_v11 = vcombine.low %v74_v9, %v75_v10  ;;  %v1134_v10 = vld [vmem:[%s1412_s2 + $0x38] sm:$0xff]  }
  0x16   :  { %1088 = vmatprep.subr.bf16.mxu1 %v1119_v53 }
  0x17   :  { %1063 = vmatpush3.bf16.msra.mxu0 %v1108_v15  ;;  %435 = vperm.xlu1 %1102, %v365_v45   ;;  %v1125_v15 = vld [vmem:[%s1411_s4 + $0x40] sm:$0xff]  }
  0x18   :  { %1064 = vmatprep.subr.bf16.mxu0 %v1109_v19 }
  0x19   :  { %430 = vperm.xlu0 %1101, %v364_v39   ;;  %1096 = vmatpush3.bf16.msra.mxu1 %v1120_v57 }
  0x1a   :  { %1089 = vmatprep.subr.bf16.mxu1 %v1121_v61 }
  0x1b   :  { %1065 = vmatpush3.bf16.msra.mxu0 %v1109_v19  ;;  %385 = vperm.xlu1 %1102, %v355_v54  }
  0x1c   :  { %1066 = vmatprep.subr.bf16.mxu0 %v1110_v24 }
  0x1d   :  { %380 = vperm.xlu0 %1101, %v354_v52   ;;  %1097 = vmatpush3.bf16.msra.mxu1 %v1122_v12 }
  0x1e   :  { %1090 = vmatprep.subr.bf16.mxu1 %v1123_v13 }
  0x1f   :  { %1067 = vmatpush3.bf16.msra.mxu0 %v1110_v24  ;;  %445 = vperm.xlu1 %1102, %v367_v0  }
  0x20   :  { %988 = vmatprep.subr.bf16.mxu0 %v1111_v18  ;;  %v1129_v18 = vld [vmem:[%s1412_s2 + $0x10] sm:$0xff]  }
  0x21   :  { %440 = vperm.xlu0 %1101, %v366_v60   ;;  %1098 = vmatpush3.bf16.msra.mxu1 %v1124_v14 }
  0x22   :  { %1069 = vmatmul.mubr.bf16.vlgmr.msra.gmra.mxu0 %v853_v42  ;;  %1091 = vmatprep.subr.bf16.mxu1 %v1125_v15 }
  0x23   :  { %1072 = vmatprep.mubr.bf16.mxu0 %v854_v46  ;;  %989 = vmatpush3.bf16.msra.mxu0 %v1112_v23 }
  0x24   :  { %990 = vmatprep.subr.bf16.mxu0 %v1113_v26  ;;  %719 = vmatprep.mubr.bf16.mxu1 %v1129_v18 }
  0x25   :  { %1099 = vmatpush3.bf16.msra.mxu1 %v1126_v16 }
  0x27   :  { %991 = vmatpush3.bf16.msra.mxu0 %v1114_v30 }
  0x28   :  { %992 = vmatprep.subr.bf16.mxu0 %v1115_v33 }
  0x2a   :  { %1073 = vmatmul.mubr.bf16.gmra.mxu0 %v855_v55 }
  0x2b   :  { %1076 = vmatprep.mubr.bf16.mxu0 %v856_v58  ;;  %993 = vmatpush3.bf16.msra.mxu0 %v1116_v40 }
  0x2c   :  { %994 = vmatprep.subr.bf16.mxu0 %v1117_v41 }
  0x2f   :  { %995 = vmatpush3.bf16.msra.mxu0 %v1118_v49 }
  0x30   :  { %996 = vmatprep.subr.bf16.mxu0 %v1119_v53 }
  0x32   :  { %1077 = vmatmul.mubr.bf16.gmra.mxu0 %v857_v5  ;;  %v1133_v5 = vld [vmem:[%s1412_s2 + $0x30] sm:$0xff]  }
  0x33   :  { %1080 = vmatprep.mubr.bf16.mxu0 %v858_v6  ;;  %997 = vmatpush3.bf16.msra.mxu0 %v1120_v57  ;;  %v1131_v57 = vld [vmem:[%s1412_s2 + $0x20] sm:$0xff]  }
  0x34   :  { %998 = vmatprep.subr.bf16.mxu0 %v1121_v61 }
  0x37   :  { %999 = vmatpush3.bf16.msra.mxu0 %v1122_v12 }
  0x38   :  { %1000 = vmatprep.subr.bf16.mxu0 %v1123_v13 }
  0x3a   :  { %1081 = vmatmul.mubr.bf16.gmra.mxu0 %v859_v11 }
  0x3b   :  { %1001 = vmatpush3.bf16.msra.mxu0 %v1124_v14  ;;  %703 = vmatprep.mubr.bf16.mxu0 %v1127_v17 }
  0x3c   :  { %1002 = vmatprep.subr.bf16.mxu0 %v1125_v15 }
  0x3f   :  { %1003 = vmatpush3.bf16.msra.mxu0 %v1126_v16 }
  0x7e   :  { %v401_v19 = vpop.permute.xlu1 %400 }
  0x80   :  { %v391_v20 = vpop.permute.xlu0 %390 }
  0x82   :  { %v406_v21 = vpop.permute.xlu1 %405 }
  0x84   :  { %v396_v22 = vpop.permute.xlu0 %395 }
  0x86   :  { %v416_v23 = vpop.permute.xlu1 %415 }
  0x88   :  { %v411_v24 = vpop.permute.xlu0 %410 }
  0x8a   :  { %v426_v25 = vpop.permute.xlu1 %425 }
  0x8c   :  { %v421_v26 = vpop.permute.xlu0 %420 }
  0x8e   :  { %v376_v27 = vpop.permute.xlu1 %375 }
  0x90   :  { %v371_v28 = vpop.permute.xlu0 %370 }
  0x92   :  { %v436_v31 = vpop.permute.xlu1 %435 }
  0x94   :  { %v431_v33 = vpop.permute.xlu0 %430 }
  0x96   :  { %v386_v40 = vpop.permute.xlu1 %385 }
  0x98   :  { %v381_v42 = vpop.permute.xlu0 %380 }
  0x9a   :  { %v446_v12 = vpop.permute.xlu1 %445 }
  0x9c   :  { %v441_v14 = vpop.permute.xlu0 %440 }
  0xe2   :  { %v1070_v29 = vpop.f32.mrf.mxu0 }
  0xe3   :  { %v450_v46 = vmul.f32 %v1070_v29, %v381_v42 }
  0xe4   :  { %v238_v30 = vpop.f32.mrf.mxu0 }
  0xe5   :  { %v448_v35 = vmul.f32 %v371_v28, %v238_v30 }
  0xe6   :  { %v1071_v32 = vpop.f32.mrf.mxu0 }
  0xe7   :  { %v451_v44 = vmul.f32 %v1071_v32, %v386_v40 }
  0xe8   :  { %v241_v34 = vpop.f32.mrf.mxu0 }
  0xe9   :  { %v449_v36 = vmul.f32 %v376_v27, %v241_v34  ;;  %v465_v51 = vpack.c.bf16 %v451_v44, %v450_v46 }
  0xea   :  { %v1074_v37 = vpop.f32.mrf.mxu0 }
  0xeb   :  { %v464_v39 = vpack.c.bf16 %v449_v36, %v448_v35  ;;  %v454_v56 = vmul.f32 %v1074_v37, %v401_v19 }
  0xec   :  { %v254_v41 = vpop.f32.mrf.mxu0 }
  0xed   :  { %704 = vmatmul.mubr.bf16.vlgmr.msra.gmra.mxu0 %v464_v39  ;;  %v452_v47 = vmul.f32 %v391_v20, %v254_v41 }
  0xee   :  { %v1075_v43 = vpop.f32.mrf.mxu0  ;;  %711 = vmatprep.mubr.bf16.mxu0 %v1128_v38 }
  0xef   :  { %v455_v54 = vmul.f32 %v1075_v43, %v406_v21  ;;  %v1366_v21 = vld [vmem:[%s1413_s5] ss:$0 sm:$0xff] }
  0xf0   :  { %v257_v45 = vpop.f32.mrf.mxu0 }
  0xf1   :  { %v453_v48 = vmul.f32 %v396_v22, %v257_v45  ;;  %v467_v58 = vpack.c.bf16 %v455_v54, %v454_v56 }
  0xf2   :  { %v1078_v49 = vpop.f32.mrf.mxu0 }
  0xf3   :  { %v466_v52 = vpack.c.bf16 %v453_v48, %v452_v47  ;;  %v458_v4 = vmul.f32 %v1078_v49, %v421_v26 }
  0xf4   :  { %v270_v53 = vpop.f32.mrf.mxu0 }
  0xf5   :  { %712 = vmatmul.mubr.bf16.gmra.mxu0 %v465_v51  ;;  %720 = vmatmul.mubr.bf16.vlgmr.msra.gmra.mxu1 %v466_v52  ;;  %v456_v62 = vmul.f32 %v411_v24, %v270_v53 }
  0xf6   :  { %727 = vmatprep.mubr.bf16.mxu1 %v1130_v50  ;;  %v1079_v55 = vpop.f32.mrf.mxu0 }
  0xf7   :  { %v459_v2 = vmul.f32 %v1079_v55, %v426_v25 }
  0xf8   :  { %v273_v59 = vpop.f32.mrf.mxu0 }
  0xf9   :  { %v457_v60 = vmul.f32 %v416_v23, %v273_v59  ;;  %v469_v6 = vpack.c.bf16 %v459_v2, %v458_v4 }
  0xfa   :  { %v1082_v61 = vpop.f32.mrf.mxu0 }
  0xfb   :  { %v468_v0 = vpack.c.bf16 %v457_v60, %v456_v62  ;;  %v462_v15 = vmul.f32 %v1082_v61, %v441_v14 }
  0xfc   :  { %v286_v1 = vpop.f32.mrf.mxu0 }
  0xfd   :  { %728 = vmatmul.mubr.bf16.gmra.mxu1 %v467_v58  ;;  %v460_v9 = vmul.f32 %v431_v33, %v286_v1 }
  0xfe   :  { %735 = vmatprep.mubr.bf16.mxu1 %v1131_v57  ;;  %v1083_v3 = vpop.f32.mrf.mxu0 }
  0xff   :  { %v463_v13 = vmul.f32 %v1083_v3, %v446_v12 }
 0x100   :  { %v289_v7 = vpop.f32.mrf.mxu0 }
 0x101   :  { %v461_v8 = vmul.f32 %v436_v31, %v289_v7  ;;  %v471_v16 = vpack.c.bf16 %v463_v13, %v462_v15 }
 0x103   :  { %v470_v11 = vpack.c.bf16 %v461_v8, %v460_v9 }
 0x105   :  { %736 = vmatmul.mubr.bf16.gmra.mxu1 %v468_v0 }
 0x106   :  { %743 = vmatprep.mubr.bf16.mxu1 %v1132_v63 }
 0x10d   :  { %744 = vmatmul.mubr.bf16.gmra.mxu1 %v469_v6 }
 0x10e   :  { %751 = vmatprep.mubr.bf16.mxu1 %v1133_v5 }
 0x115   :  { %752 = vmatmul.mubr.bf16.gmra.mxu1 %v470_v11 }
 0x116   :  { %759 = vmatprep.mubr.bf16.mxu1 %v1134_v10 }
 0x11d   :  { %760 = vmatmul.mubr.bf16.gmra.mxu1 %v471_v16 }
 0x1ad   :  { %v1004_v17 = vpop.f32.mrf.mxu0 }
 0x1af   :  { %v1005_v18 = vpop.f32.mrf.mxu0 }
 0x1b0   :  { %v1006_v20 = vadd.f32 %v1005_v18, %v1004_v17 }
 0x1b1   :  { %v1007_v19 = vpop.f32.mrf.mxu0 }
 0x1b2   :  { %v706_v26 = vadd.f32 %v1006_v20, %v1366_v21 }
 0x1b3   :  { %v1008_v22 = vpop.f32.mrf.mxu0 }
 0x1b4   :  { %v1009_v23 = vadd.f32 %v1008_v22, %v1007_v19 }
 0x1b5   :  { %v1010_v24 = vpop.f32.mrf.mxu0  ;;  %v1016_v25 = vpop.f32.mrf.mxu1 }
 0x1b6   :  { %v709_v27 = vadd.f32 %v1009_v23, %v1366_v21 }
 0x1b7   :  { %v1011_v28 = vpop.f32.mrf.mxu0  ;;  %v1017_v29 = vpop.f32.mrf.mxu1 }
 0x1b8   :  { %v928_v30 = vpack.c.bf16 %v709_v27, %v706_v26  ;;  %v1012_v33 = vadd.f32 %v1011_v28, %v1010_v24  ;;  %v1018_v34 = vadd.f32 %v1017_v29, %v1016_v25 }
 0x1b9   :  { %v1013_v31 = vpop.f32.mrf.mxu0  ;;  %v1019_v32 = vpop.f32.mrf.mxu1 }
 0x1ba   :  { %929 = vst [vmem:[%s1414_s6] sm:$0xff] %v928_v30   ;;  %v714_v40 = vadd.f32 %v1012_v33, %v1366_v21  ;;  %v722_v41 = vadd.f32 %v1018_v34, %v1366_v21 }
 0x1bb   :  { %v1014_v35 = vpop.f32.mrf.mxu0  ;;  %v1020_v36 = vpop.f32.mrf.mxu1 }
 0x1bc   :  { %v1015_v37 = vadd.f32 %v1014_v35, %v1013_v31  ;;  %v1021_v38 = vadd.f32 %v1020_v36, %v1019_v32 }
 0x1bd   :  { %v1022_v39 = vpop.f32.mrf.mxu1 }
 0x1be   :  { %v717_v42 = vadd.f32 %v1015_v37, %v1366_v21  ;;  %v725_v43 = vadd.f32 %v1021_v38, %v1366_v21 }
 0x1bf   :  { %v1023_v44 = vpop.f32.mrf.mxu1 }
 0x1c0   :  { %v933_v45 = vpack.c.bf16 %v717_v42, %v714_v40  ;;  %v938_v46 = vpack.c.bf16 %v725_v43, %v722_v41  ;;  %v1024_v48 = vadd.f32 %v1023_v44, %v1022_v39 }
 0x1c1   :  { %v1025_v47 = vpop.f32.mrf.mxu1 }
 0x1c2   :  { %965 = vst [vmem:[%s1414_s6 + $0x8] sm:$0xff] %v933_v45   ;;  %966 = vst [vmem:[%s1414_s6 + $0x10] sm:$0xff] %v938_v46   ;;  %v730_v52 = vadd.f32 %v1024_v48, %v1366_v21 }
 0x1c3   :  { %v1026_v49 = vpop.f32.mrf.mxu1 }
 0x1c4   :  { %v1027_v50 = vadd.f32 %v1026_v49, %v1025_v47 }
 0x1c5   :  { %v1028_v51 = vpop.f32.mrf.mxu1 }
 0x1c6   :  { %v733_v53 = vadd.f32 %v1027_v50, %v1366_v21 }
 0x1c7   :  { %v1029_v54 = vpop.f32.mrf.mxu1 }
 0x1c8   :  { %v943_v55 = vpack.c.bf16 %v733_v53, %v730_v52  ;;  %v1030_v57 = vadd.f32 %v1029_v54, %v1028_v51 }
 0x1c9   :  { %v1031_v56 = vpop.f32.mrf.mxu1 }
 0x1ca   :  { %967 = vst [vmem:[%s1414_s6 + $0x18] sm:$0xff] %v943_v55   ;;  %v738_v61 = vadd.f32 %v1030_v57, %v1366_v21 }
 0x1cb   :  { %v1032_v58 = vpop.f32.mrf.mxu1 }
 0x1cc   :  { %v1033_v59 = vadd.f32 %v1032_v58, %v1031_v56 }
 0x1cd   :  { %v1034_v60 = vpop.f32.mrf.mxu1 }
 0x1ce   :  { %v741_v62 = vadd.f32 %v1033_v59, %v1366_v21 }
 0x1cf   :  { %v1035_v63 = vpop.f32.mrf.mxu1 }
 0x1d0   :  { %v948_v0 = vpack.c.bf16 %v741_v62, %v738_v61  ;;  %v1036_v2 = vadd.f32 %v1035_v63, %v1034_v60 }
 0x1d1   :  { %v1037_v1 = vpop.f32.mrf.mxu1 }
 0x1d2   :  { %968 = vst [vmem:[%s1414_s6 + $0x20] sm:$0xff] %v948_v0   ;;  %v746_v6 = vadd.f32 %v1036_v2, %v1366_v21 }
 0x1d3   :  { %v1038_v3 = vpop.f32.mrf.mxu1 }
 0x1d4   :  { %v1039_v4 = vadd.f32 %v1038_v3, %v1037_v1 }
 0x1d5   :  { %v1040_v5 = vpop.f32.mrf.mxu1 }
 0x1d6   :  { %v749_v7 = vadd.f32 %v1039_v4, %v1366_v21 }
 0x1d7   :  { %v1041_v8 = vpop.f32.mrf.mxu1 }
 0x1d8   :  { %v953_v9 = vpack.c.bf16 %v749_v7, %v746_v6  ;;  %v1042_v11 = vadd.f32 %v1041_v8, %v1040_v5 }
 0x1d9   :  { %v1043_v10 = vpop.f32.mrf.mxu1 }
 0x1da   :  { %969 = vst [vmem:[%s1414_s6 + $0x28] sm:$0xff] %v953_v9   ;;  %v754_v15 = vadd.f32 %v1042_v11, %v1366_v21 }
 0x1db   :  { %v1044_v12 = vpop.f32.mrf.mxu1 }
 0x1dc   :  { %v1045_v13 = vadd.f32 %v1044_v12, %v1043_v10 }
 0x1dd   :  { %v1046_v14 = vpop.f32.mrf.mxu1 }
 0x1de   :  { %v757_v16 = vadd.f32 %v1045_v13, %v1366_v21 }
 0x1df   :  { %v1047_v17 = vpop.f32.mrf.mxu1 }
 0x1e0   :  { %v958_v18 = vpack.c.bf16 %v757_v16, %v754_v15  ;;  %v1048_v20 = vadd.f32 %v1047_v17, %v1046_v14 }
 0x1e1   :  { %v1049_v19 = vpop.f32.mrf.mxu1 }
 0x1e2   :  { %970 = vst [vmem:[%s1414_s6 + $0x30] sm:$0xff] %v958_v18   ;;  %v762_v24 = vadd.f32 %v1048_v20, %v1366_v21 }
 0x1e3   :  { %v1050_v22 = vpop.f32.mrf.mxu1 }
 0x1e4   :  { %v1051_v23 = vadd.f32 %v1050_v22, %v1049_v19 }
 0x1e6   :  { %v765_v25 = vadd.f32 %v1051_v23, %v1366_v21 }
 0x1e8   :  { %v963_v26 = vpack.c.bf16 %v765_v25, %v762_v24 }
 0x1ea   :  { %971 = vst [vmem:[%s1414_s6 + $0x38] sm:$0xff] %v963_v26  }

</bundles_post_ra>
